<compile_context>
chip_gen: v5e
topology: v5e:2x2
jax: 0.10.0
libtpu: 0.0.40
codegen_flags: <defaults>
</compile_context>

<pallas_src>
import functools

import jax
import jax.numpy as jnp
from jax.experimental import pallas as pl
from jax.experimental.pallas import tpu as pltpu


# ---------------------------------------------------------------------------
# Fused single-pass kernel: whole (nb, C, HW) tile resident in VMEM.
# ---------------------------------------------------------------------------
def _se_fused_kernel(x_ref, w1t_ref, b1_ref, w2t_ref, b2_ref, o_ref):
    x = x_ref[...]                                                 # (nb, C, HW)

    # squeeze: global average pool over the flattened spatial (lane) axis,
    # accumulated in f32.
    pooled = jnp.mean(x, axis=2, dtype=jnp.float32)                # (nb, C)

    # fc1 (1x1 conv == matmul) + SiLU
    h = jnp.dot(pooled, w1t_ref[...],
                preferred_element_type=jnp.float32) + b1_ref[...]  # (nb, S)
    h = h * jax.nn.sigmoid(h)

    # fc2 (1x1 conv == matmul) + Sigmoid
    s = jnp.dot(h, w2t_ref[...],
                preferred_element_type=jnp.float32) + b2_ref[...]  # (nb, C)
    s = jax.nn.sigmoid(s)

    # excite: broadcast the per-(image, channel) scale over lanes, in x.dtype.
    o_ref[...] = x * s.astype(x.dtype)[:, :, None]


# ---------------------------------------------------------------------------
# Fallback pass 1: pooled mean accumulated across HW tiles.
# ---------------------------------------------------------------------------
def _se_pool_kernel(x_ref, p_ref, *, hw_total, hw_tile):
    hw = pl.program_id(1)

    @pl.when(hw == 0)
    def _():
        p_ref[...] = jnp.zeros_like(p_ref)

    x = x_ref[...]                                                 # (1, C, hw_tile)
    if hw_total % hw_tile:
        # mask the padded lanes of the (possibly partial) last spatial tile
        lane = jax.lax.broadcasted_iota(jnp.int32, x.shape, 2)
        valid = (hw * hw_tile + lane) < hw_total
        x = jnp.where(valid, x, jnp.zeros_like(x))
    p_ref[...] += jnp.sum(x, axis=2, dtype=jnp.float32)[:, None, :]

    @pl.when(hw == pl.num_programs(1) - 1)
    def _():
        p_ref[...] = p_ref[...] * (1.0 / hw_total)


# ---------------------------------------------------------------------------
# Fallback pass 2: recompute tiny FC chain per tile and apply the scale.
# ---------------------------------------------------------------------------
def _se_scale_kernel(x_ref, p_ref, w1t_ref, b1_ref, w2t_ref, b2_ref, o_ref):
    pooled = p_ref[...][:, 0, :]                                   # (1, C) f32
    h = jnp.dot(pooled, w1t_ref[...],
                preferred_element_type=jnp.float32) + b1_ref[...]  # (1, S)
    h = h * jax.nn.sigmoid(h)
    s = jnp.dot(h, w2t_ref[...],
                preferred_element_type=jnp.float32) + b2_ref[...]  # (1, C)
    s = jax.nn.sigmoid(s)
    x = x_ref[...]                                                 # (1, C, hw_tile)
    o_ref[...] = x * s.astype(x.dtype)[:, :, None]


def _tpu_vmem_and_cores():
    """Generation-aware (VMEM capacity, TensorCores-per-chip) with a safe fallback."""
    vmem_cap = 64 << 20            # conservative default (v7x per-core VMEM)
    try:
        info = pltpu.get_tpu_info()
        vmem_cap = int(getattr(info, "vmem_capacity_bytes", vmem_cap))
    except Exception:
        pass
    # Heuristic: chips with <=64 MiB VMEM per core (v7x) run 2 TensorCores per
    # chip, so a "parallel" grid axis is sharded 2-ways.
    num_tc = 2 if vmem_cap <= (64 << 20) else 1
    return vmem_cap, num_tc


def squeeze_excitation(x_nchw, w1, b1, w2, b2, *, force_hw_tiling=False):
    """EfficientNet SqueezeExcitation forward.

    x_nchw: (N, C, H, W) with C == expand_ch
    w1: (S, C), b1: (S,)   -- fc1 1x1-conv weight / bias (S = squeeze_ch)
    w2: (C, S), b2: (C,)   -- fc2 1x1-conv weight / bias
    """
    N, C, H, W = x_nchw.shape
    S = w1.shape[0]
    HW = H * W
    itemsize = jnp.dtype(x_nchw.dtype).itemsize
    w_item = jnp.dtype(w1.dtype).itemsize

    x = x_nchw.reshape(N, C, HW)
    # Pre-transpose the tiny weights so the in-kernel matmuls are row-major:
    #   (rows, C) @ (C, S)  and  (rows, S) @ (S, C)   -> lane-dense outputs.
    w1t = jnp.transpose(w1)            # (C, S)
    w2t = jnp.transpose(w2)            # (S, C)
    b1r = b1.reshape(1, S)
    b2r = b2.reshape(1, C)

    weight_bytes = (C * S * 2 + S + C) * w_item
    per_img = C * HW * itemsize

    # ---- generation-aware VMEM budget --------------------------------------
    vmem_cap, num_tc = _tpu_vmem_and_cores()
    # 2x in + 2x out double buffers + compute temporaries (incl. a possible
    # f32 copy of the tile for sub-32-bit inputs).
    fudge = 6 + (4 // itemsize)
    block_budget = (vmem_cap // 2 - weight_bytes - (2 << 20)) // fudge
    block_budget = max(block_budget, 512 << 10)

    def vmem_limit_for(block_bytes):
        needed = fudge * block_bytes + weight_bytes + (2 << 20)
        return int(min((vmem_cap * 3) // 4, max(needed, 32 << 20)))

    if not force_hw_tiling and per_img <= block_budget:
        # ---- fused single-pass path -----------------------------------------
        nb = max(1, min(N, block_budget // per_img))
        if num_tc >= 2 and N >= 2 * num_tc:
            # keep >=2 grid steps per TensorCore so in/out DMAs overlap
            nb = min(nb, max(1, N // (2 * num_tc)))
        grid = (pl.cdiv(N, nb),)
        block_bytes = nb * per_img

        cost = pl.CostEstimate(
            flops=2 * N * C * HW + 4 * N * C * S,
            transcendentals=N * (S + C),
            bytes_accessed=2 * N * C * HW * itemsize + weight_bytes,
        )

        out = pl.pallas_call(
            _se_fused_kernel,
            out_shape=jax.ShapeDtypeStruct((N, C, HW), x.dtype),
            grid_spec=pltpu.PrefetchScalarGridSpec(
                num_scalar_prefetch=0,
                grid=grid,
                in_specs=[
                    pl.BlockSpec((nb, C, HW), lambda n: (n, 0, 0)),
                    pl.BlockSpec((C, S), lambda n: (0, 0)),
                    pl.BlockSpec((1, S), lambda n: (0, 0)),
                    pl.BlockSpec((S, C), lambda n: (0, 0)),
                    pl.BlockSpec((1, C), lambda n: (0, 0)),
                ],
                out_specs=pl.BlockSpec((nb, C, HW), lambda n: (n, 0, 0)),
            ),
            compiler_params=pltpu.CompilerParams(
                dimension_semantics=("parallel",),
                vmem_limit_bytes=vmem_limit_for(block_bytes),
            ),
            cost_estimate=cost,
        )(x, w1t, b1r, w2t, b2r)
        return out.reshape(N, C, H, W)

    # ---- fallback: per-image tile too big for VMEM -> tile the spatial axis --
    if HW <= 128:
        hw_t = HW
    else:
        hw_t = (block_budget // max(C * itemsize, 1)) // 128 * 128
        hw_t = max(128, min(hw_t, (HW // 128) * 128))
        if force_hw_tiling:
            hw_t = 128                        # small tile to exercise the path
    n_hw = pl.cdiv(HW, hw_t)
    block_bytes = C * hw_t * itemsize

    # pass 1: pooled mean (N, 1, C) in f32, accumulated across HW tiles.
    pooled = pl.pallas_call(
        functools.partial(_se_pool_kernel, hw_total=HW, hw_tile=hw_t),
        out_shape=jax.ShapeDtypeStruct((N, 1, C), jnp.float32),
        grid_spec=pltpu.PrefetchScalarGridSpec(
            num_scalar_prefetch=0,
            grid=(N, n_hw),
            in_specs=[pl.BlockSpec((1, C, hw_t), lambda n, k: (n, 0, k))],
            out_specs=pl.BlockSpec((1, 1, C), lambda n, k: (n, 0, 0)),
        ),
        compiler_params=pltpu.CompilerParams(
            dimension_semantics=("parallel", "arbitrary"),
            vmem_limit_bytes=vmem_limit_for(block_bytes),
        ),
    )(x)

    # pass 2: apply the per-(image, channel) scale tile by tile.
    out = pl.pallas_call(
        _se_scale_kernel,
        out_shape=jax.ShapeDtypeStruct((N, C, HW), x.dtype),
        grid_spec=pltpu.PrefetchScalarGridSpec(
            num_scalar_prefetch=0,
            grid=(N, n_hw),
            in_specs=[
                pl.BlockSpec((1, C, hw_t), lambda n, k: (n, 0, k)),
                pl.BlockSpec((1, 1, C), lambda n, k: (n, 0, 0)),
                pl.BlockSpec((C, S), lambda n, k: (0, 0)),
                pl.BlockSpec((1, S), lambda n, k: (0, 0)),
                pl.BlockSpec((S, C), lambda n, k: (0, 0)),
                pl.BlockSpec((1, C), lambda n, k: (0, 0)),
            ],
            out_specs=pl.BlockSpec((1, C, hw_t), lambda n, k: (n, 0, k)),
        ),
        compiler_params=pltpu.CompilerParams(
            dimension_semantics=("parallel", "parallel"),
            vmem_limit_bytes=vmem_limit_for(block_bytes),
        ),
    )(x, pooled, w1t, b1r, w2t, b2r)
    return out.reshape(N, C, H, W)


def reference(x, w1, b1, w2, b2):
    pooled = jnp.mean(x, axis=(2, 3), keepdims=True)                        # (N,C,1,1)
    h = jnp.einsum('sc,ncij->nsij', w1, pooled) + b1[None, :, None, None]   # (N,S,1,1)
    h = h * jax.nn.sigmoid(h)
    s = jnp.einsum('cs,nsij->ncij', w2, h) + b2[None, :, None, None]        # (N,C,1,1)
    s = jax.nn.sigmoid(s)
    return x * s


if __name__ == "__main__":
    # Module config: input_ch=16, squeeze_rate=4 -> squeeze_ch=4; expand_ch=32.
    input_ch, expand_ch, squeeze_rate = 16, 32, 4
    squeeze_ch = input_ch // squeeze_rate
    N, H, W = 8, 16, 16            # HW = 256: lane-dense multiple of 128

    key = jax.random.PRNGKey(0)
    kx, k1, kb1, k2, kb2 = jax.random.split(key, 5)

    x = jax.random.normal(kx, (N, expand_ch, H, W), dtype=jnp.float32)
    # 1x1 conv weights: (out_ch, in_ch, 1, 1) -> stored as (out_ch, in_ch); bias (out_ch,)
    w1 = jax.random.normal(k1, (squeeze_ch, expand_ch), dtype=jnp.float32) * 0.1
    b1 = jax.random.normal(kb1, (squeeze_ch,), dtype=jnp.float32) * 0.1
    w2 = jax.random.normal(k2, (expand_ch, squeeze_ch), dtype=jnp.float32) * 0.1
    b2 = jax.random.normal(kb2, (expand_ch,), dtype=jnp.float32) * 0.1

    ref = reference(x, w1, b1, w2, b2)

    # Fused single-pass path (the normal case).
    se = jax.jit(squeeze_excitation)
    out = jax.block_until_ready(se(x, w1, b1, w2, b2))
    assert out.shape == (N, expand_ch, H, W)
    assert jnp.allclose(out, ref, atol=1e-5, rtol=1e-5), "fused path mismatch"

    # HW-tiled fallback path (used when one image's C*HW exceeds the VMEM budget).
    se_fb = jax.jit(functools.partial(squeeze_excitation, force_hw_tiling=True))
    out_fb = jax.block_until_ready(se_fb(x, w1, b1, w2, b2))
    assert jnp.allclose(out_fb, ref, atol=1e-5, rtol=1e-5), "fallback path mismatch"

    print("KERNEL_OK")
</pallas_src>

<mosaic_0001>
module attributes {stable_mosaic.version = 11 : i64} {
  func.func @_se_fused_kernel(%arg0: i32, %arg1: memref<2x32x256xf32, #tpu.memory_space<vmem>>, %arg2: memref<32x4xf32, #tpu.memory_space<vmem>>, %arg3: memref<1x4xf32, #tpu.memory_space<vmem>>, %arg4: memref<4x32xf32, #tpu.memory_space<vmem>>, %arg5: memref<1x32xf32, #tpu.memory_space<vmem>>, %arg6: memref<2x32x256xf32, #tpu.memory_space<vmem>>) attributes {dimension_semantics = [#tpu.dimension_semantics<parallel>], iteration_bounds = array<i64: 4>, scalar_prefetch = 0 : i64, scratch_operands = 0 : i64, tpu.core_type = #tpu.core_type<tc>, window_params = [{transform_indices = @transform_0, window_bounds = array<i64: 2, 32, 256>}, {pipeline_mode = #tpu.pipeline_mode<synchronous>, transform_indices = @transform_1, window_bounds = array<i64: 32, 4>}, {pipeline_mode = #tpu.pipeline_mode<synchronous>, transform_indices = @transform_2, window_bounds = array<i64: 1, 4>}, {pipeline_mode = #tpu.pipeline_mode<synchronous>, transform_indices = @transform_3, window_bounds = array<i64: 4, 32>}, {pipeline_mode = #tpu.pipeline_mode<synchronous>, transform_indices = @transform_4, window_bounds = array<i64: 1, 32>}, {transform_indices = @transform_5, window_bounds = array<i64: 2, 32, 256>}]} {
    %c0 = arith.constant 0 : index
    %c0_0 = arith.constant 0 : index
    %c0_1 = arith.constant 0 : index
    %0 = vector.load %arg1[%c0, %c0_0, %c0_1] : memref<2x32x256xf32, #tpu.memory_space<vmem>>, vector<2x32x256xf32>
    %cst = arith.constant dense<0.000000e+00> : vector<2x32xf32>
    %1 = vector.multi_reduction <add>, %0, %cst [2] : vector<2x32x256xf32> to vector<2x32xf32>
    %cst_2 = arith.constant 2.560000e+02 : f32
    %2 = vector.broadcast %cst_2 : f32 to vector<2x32xf32>
    %3 = arith.divf %1, %2 : vector<2x32xf32>
    %c0_3 = arith.constant 0 : index
    %c0_4 = arith.constant 0 : index
    %4 = vector.load %arg2[%c0_3, %c0_4] : memref<32x4xf32, #tpu.memory_space<vmem>>, vector<32x4xf32>
    %cst_5 = arith.constant dense<0.000000e+00> : vector<2x4xf32>
    %5 = tpu.matmul %3, %4, %cst_5 {dimension_numbers = #tpu.dot_dimension_numbers<[1], [0], [0], [1], [0, 0, 1, 1], [], []>} : vector<2x32xf32>, vector<32x4xf32>, vector<2x4xf32> -> vector<2x4xf32>
    %c0_6 = arith.constant 0 : index
    %c0_7 = arith.constant 0 : index
    %6 = vector.load %arg3[%c0_6, %c0_7] : memref<1x4xf32, #tpu.memory_space<vmem>>, vector<1x4xf32>
    %7 = vector.broadcast %6 : vector<1x4xf32> to vector<2x4xf32>
    %8 = arith.addf %5, %7 : vector<2x4xf32>
    %9 = arith.negf %8 : vector<2x4xf32>
    %10 = math.exp %9 : vector<2x4xf32>
    %cst_8 = arith.constant 1.000000e+00 : f32
    %11 = vector.broadcast %cst_8 : f32 to vector<2x4xf32>
    %12 = arith.addf %11, %10 : vector<2x4xf32>
    %13 = arith.divf %11, %12 : vector<2x4xf32>
    %14 = arith.mulf %8, %13 : vector<2x4xf32>
    %c0_9 = arith.constant 0 : index
    %c0_10 = arith.constant 0 : index
    %15 = vector.load %arg4[%c0_9, %c0_10] : memref<4x32xf32, #tpu.memory_space<vmem>>, vector<4x32xf32>
    %cst_11 = arith.constant dense<0.000000e+00> : vector<2x32xf32>
    %16 = tpu.matmul %14, %15, %cst_11 {dimension_numbers = #tpu.dot_dimension_numbers<[1], [0], [0], [1], [0, 0, 1, 1], [], []>} : vector<2x4xf32>, vector<4x32xf32>, vector<2x32xf32> -> vector<2x32xf32>
    %c0_12 = arith.constant 0 : index
    %c0_13 = arith.constant 0 : index
    %17 = vector.load %arg5[%c0_12, %c0_13] : memref<1x32xf32, #tpu.memory_space<vmem>>, vector<1x32xf32>
    %18 = vector.broadcast %17 : vector<1x32xf32> to vector<2x32xf32>
    %19 = arith.addf %16, %18 : vector<2x32xf32>
    %20 = arith.negf %19 : vector<2x32xf32>
    %21 = math.exp %20 : vector<2x32xf32>
    %cst_14 = arith.constant 1.000000e+00 : f32
    %22 = vector.broadcast %cst_14 : f32 to vector<2x32xf32>
    %23 = arith.addf %22, %21 : vector<2x32xf32>
    %24 = arith.divf %22, %23 : vector<2x32xf32>
    %25 = vector.shape_cast %24 : vector<2x32xf32> to vector<2x32x1xf32>
    %26 = vector.broadcast %25 : vector<2x32x1xf32> to vector<2x32x256xf32>
    %27 = arith.mulf %0, %26 : vector<2x32x256xf32>
    %c0_15 = arith.constant 0 : index
    %c0_16 = arith.constant 0 : index
    %c0_17 = arith.constant 0 : index
    %28 = vector.load %arg6[%c0_15, %c0_16, %c0_17] : memref<2x32x256xf32, #tpu.memory_space<vmem>>, vector<2x32x256xf32>
    tpu.vector_store %arg6[%c0_15, %c0_16, %c0_17], %27 {strides = array<i32>} : memref<2x32x256xf32, #tpu.memory_space<vmem>>, vector<2x32x256xf32>,
    return
  }
  func.func @transform_0(%arg0: i32) -> (i32, i32, i32) {
    %c0_i32 = arith.constant 0 : i32
    %c0_i32_0 = arith.constant 0 : i32
    %c0_i32_1 = arith.constant 0 : i32
    return %arg0, %c0_i32, %c0_i32_0 : i32, i32, i32
  }
  func.func @transform_1(%arg0: i32) -> (i32, i32) {
    %c0_i32 = arith.constant 0 : i32
    %c0_i32_0 = arith.constant 0 : i32
    %c0_i32_1 = arith.constant 0 : i32
    return %c0_i32, %c0_i32_0 : i32, i32
  }
  func.func @transform_2(%arg0: i32) -> (i32, i32) {
    %c0_i32 = arith.constant 0 : i32
    %c0_i32_0 = arith.constant 0 : i32
    %c0_i32_1 = arith.constant 0 : i32
    return %c0_i32, %c0_i32_0 : i32, i32
  }
  func.func @transform_3(%arg0: i32) -> (i32, i32) {
    %c0_i32 = arith.constant 0 : i32
    %c0_i32_0 = arith.constant 0 : i32
    %c0_i32_1 = arith.constant 0 : i32
    return %c0_i32, %c0_i32_0 : i32, i32
  }
  func.func @transform_4(%arg0: i32) -> (i32, i32) {
    %c0_i32 = arith.constant 0 : i32
    %c0_i32_0 = arith.constant 0 : i32
    %c0_i32_1 = arith.constant 0 : i32
    return %c0_i32, %c0_i32_0 : i32, i32
  }
  func.func @transform_5(%arg0: i32) -> (i32, i32, i32) {
    %c0_i32 = arith.constant 0 : i32
    %c0_i32_0 = arith.constant 0 : i32
    %c0_i32_1 = arith.constant 0 : i32
    return %arg0, %c0_i32, %c0_i32_0 : i32, i32, i32
  }
}

</mosaic_0001>

<bundles_post_ra>
// kernel: squeeze_excitation.1
= control target key start
LH: loop header
LB: loop body
LE: loop exit
PB: predicated region body
PF: predicated region fallthrough
CT: control target
= control target key end

     0   :  { %s652_s18 = smov 0   ;;  %s781_s0 = inlined_call_operand.vmem [shape: f32[8,32,256], index: 0, kind: input, shape index: {}]   ;;  %s782_s1 = inlined_call_operand.vmem [shape: f32[32,4], index: 1, kind: input, shape index: {}]   ;;  %s783_s2 = inlined_call_operand.vmem [shape: f32[1,4], index: 2, kind: input, shape index: {}]   ;;  %s784_s3 = inlined_call_operand.vmem [shape: f32[4,32], index: 3, kind: input, shape index: {}]   ;;  %s785_s4 = inlined_call_operand.vmem [shape: f32[1,32], index: 4, kind: input, shape index: {}]   ;;  %s786_s5 = inlined_call_operand.vmem [shape: f32[8,32,256], index: 5, kind: output, shape index: {}]  }
   0x1 LB: > { %s563_s19 = sadd.s32 4294967295, %s619_s18   ;;  %p567_p0 = scmp.ge.s32.totalorder %s619_s18, 1  ;;  %s619_s18 = sphi %s652_s18, %s15_s18  }
   0x2   : > { %p189_p1 = scmp.lt.s32.totalorder %s619_s18, 5 }
   0x4   : > { %p190_p2 = pnand %p567_p0, %p189_p1 }
   0x5   : > { %s568_s20 = sshll.u32 (!%p190_p2), %s563_s19, 1 }
   0x6   : > { %193 = sbr.rel (%p190_p2) target bundleno = 623 (0x26f), region = 40  ;;  %p220_p3 = scmp.lt.s32.totalorder (!%p190_p2), %s568_s20, 7 }
   0xb   : > { %s788_s20 = smov (!%p220_p3, %s568_s20), 7  ;;  %v291_v24 = vld [vmem:[%s782_s1 + $0x18] sm:$0xff]  ;;  %v621_v25 = vmov 256.0   ;;  %v290_v26 = vld [vmem:[%s782_s1 + $0x10] sm:$0xff]  ;;  %v289_v27 = vld [vmem:[%s782_s1 + $0x8] sm:$0xff]  ;;  %v304_v36 = vlaneseq  ;;  %vm309_vm1 = vcmask 130112  }
   0xc   : > { %s581_s21 = sshll.u32 %s788_s20, 6  ;;  %603 = vrcp.f32 %v621_v25  ;;  %343 = vmatpush.msra.mxu0 %v291_v24  ;;  %v288_v28 = vld [vmem:[%s782_s1] sm:$0xff]  ;;  %vm313_vm2 = vcmask 195712   ;;  %vm317_vm3 = vcmask 261312   ;;  %vm326_vm4 = vcmask 1041409  }
   0xd   : > { %s224_s24 = scalar_lea.vmem %s781_s0, %s581_s21  ;;  %v305_v38 = vand.u32 127, %v304_v36  ;;  %vm328_vm5 = vcmask 261120   ;;  %v371_v24 = vld [vmem:[%s784_s3] sm:$0xf]  ;;  %vm380_vm6 = vcmask 1043456   ;;  %vm376_vm11 = vcmask 31744   ;;  %s744_s16 = scalar_lea.vmem %s786_s5, %s581_s21 }
   0xe   : > { %v668_v0 = vld [vmem:[%s224_s24 + $0x40] sm:$0xff]  ;;  %v670_v1 = vld [vmem:[%s224_s24 + $0x48] sm:$0xff]  ;;  %v686_v9 = vld [vmem:[%s224_s24 + $0x50] sm:$0xff]  ;;  %344 = vmatpush.msra.mxu0 %v290_v26  ;;  %576 = vmatpush.msk.msra.mxu1 %vm380_vm6, %v371_v24 }
   0xf   : > { %v672_v2 = vld [vmem:[%s224_s24] sm:$0xff]  ;;  %v261_v3 = vadd.f32 %v670_v1, %v668_v0  ;;  %v676_v4 = vld [vmem:[%s224_s24 + $0x8] sm:$0xff]  ;;  %v688_v10 = vld [vmem:[%s224_s24 + $0x58] sm:$0xff]  ;;  %v307_v41 = vadd.s32 4294967288, %v305_v38  ;;  %v311_v50 = vadd.s32 4294967280, %v305_v38  ;;  %v315_v54 = vadd.s32 4294967272, %v305_v38 }
  0x10   : > { %v678_v5 = vld [vmem:[%s224_s24 + $0x20] sm:$0xff]  ;;  %v680_v6 = vld [vmem:[%s224_s24 + $0x28] sm:$0xff]  ;;  %v249_v7 = vadd.f32 %v676_v4, %v672_v2  ;;  %v690_v11 = vld [vmem:[%s224_s24 + $0x10] sm:$0xff]  ;;  %v264_v15 = vadd.f32 %v688_v10, %v686_v9  ;;  %345 = vmatpush.msra.mxu0 %v289_v27 }
  0x11   : > { %v255_v8 = vadd.f32 %v680_v6, %v678_v5  ;;  %262 = vadd.xlane.f32.xlu1 %v261_v3  ;;  %v692_v12 = vld [vmem:[%s224_s24 + $0x18] sm:$0xff]  ;;  %v694_v13 = vld [vmem:[%s224_s24 + $0x60] sm:$0xff]  ;;  %v696_v14 = vld [vmem:[%s224_s24 + $0x68] sm:$0xff] }
  0x12   : > { %250 = vadd.xlane.f32.xlu0 %v249_v7  ;;  %v252_v16 = vadd.f32 %v692_v12, %v690_v11  ;;  %v267_v17 = vadd.f32 %v696_v14, %v694_v13  ;;  %v704_v18 = vld [vmem:[%s224_s24 + $0x70] sm:$0xff]  ;;  %v706_v19 = vld [vmem:[%s224_s24 + $0x78] sm:$0xff]  ;;  %v604_v29 = vpop.eup %603  ;;  %346 = vmatpush.msra.mxu0 %v288_v28 }
  0x13   : > { %256 = vadd.xlane.f32.xlu2 %v255_v8  ;;  %v708_v20 = vld [vmem:[%s224_s24 + $0x30] sm:$0xff]  ;;  %v710_v21 = vld [vmem:[%s224_s24 + $0x38] sm:$0xff]  ;;  %v270_v22 = vadd.f32 %v706_v19, %v704_v18  ;;  %v274_v30 = vmul.f32 256.0, %v604_v29  ;;  %vm278_vm0 = vweird.f32 %v604_v29 }
  0x14   : > { %v258_v23 = vadd.f32 %v710_v21, %v708_v20 }
  0x15   : > { %v275_v31 = vsub.f32 1.0, %v274_v30 }
  0x17   : > { %v276_v32 = vmul.f32 %v604_v29, %v275_v31 }
  0x19   : > { %265 = vadd.xlane.f32.xlu1 %v264_v15  ;;  %v277_v37 = vadd.f32 %v604_v29, %v276_v32 }
  0x1a   : > { %253 = vadd.xlane.f32.xlu0 %v252_v16 }
  0x1b   : > { %268 = vadd.xlane.f32.xlu2 %v267_v17  ;;  %v279_v39 = vsel %vm278_vm0, %v604_v29, %v277_v37 }
  0x21   : > { %271 = vadd.xlane.f32.xlu1 %v270_v22 }
  0x22   : > { %259 = vadd.xlane.f32.xlu0 %v258_v23  ;;  %v601_v23 = vld [vmem:[%s783_s2] ss:$0 sm:$0xff] }
  0x84   : > { %v263_v33 = vpop.xlane.xlu1 %262 }
  0x85   : > { %v251_v34 = vpop.xlane.xlu0 %250  ;;  %v284_v46 = vmul.f32 %v279_v39, %v263_v33 }
  0x86   : > { %v257_v35 = vpop.xlane.xlu2 %256  ;;  %v280_v47 = vmul.f32 %v279_v39, %v251_v34 }
  0x87   : > { %v319_v52 = vperm.slane %v284_v46, %v305_v38  ;;  %v282_v53 = vmul.f32 %v279_v39, %v257_v35 }
  0x88   : > { %v306_v55 = vperm.slane %v280_v47, %v305_v38 }
  0x89   : > { %v312_v63 = vperm.slane %v282_v53, %v311_v50 }
  0x8c   : > { %v266_v40 = vpop.xlane.xlu1 %265 }
  0x8d   : > { %v285_v42 = vmul.f32 %v279_v39, %v266_v40  ;;  %v254_v43 = vpop.xlane.xlu0 %253 }
  0x8e   : > { %v269_v44 = vpop.xlane.xlu2 %268  ;;  %v281_v45 = vmul.f32 %v279_v39, %v254_v43 }
  0x8f   : > { %v286_v48 = vmul.f32 %v279_v39, %v269_v44  ;;  %v320_v49 = vperm.slane %v285_v42, %v307_v41  ;;  %v425_v42 = vshrl.u32 %v304_v36, 7 }
  0x90   : > { %v308_v51 = vperm.slane %v281_v45, %v307_v41  ;;  %v602_v45 = vld [vmem:[%s785_s4] ss:$0 sm:$0xff] }
  0x91   : > { %v322_v56 = vperm.slane %v286_v48, %v311_v50  ;;  %v321_v58 = vsel %vm309_vm1, %v320_v49, %v319_v52  ;;  %592 = vset.pattern.permute.xlu2 %v425_v42  ;;  %v438_v43 = vadd.s32 16, %v425_v42  ;;  %v432_v44 = vadd.s32 8, %v425_v42 }
  0x92   : > { %v310_v61 = vsel %vm309_vm1, %v308_v51, %v306_v55 }
  0x93   : > { %v323_v8 = vsel %vm313_vm2, %v322_v56, %v321_v58  ;;  %v314_v15 = vsel %vm313_vm2, %v312_v63, %v310_v61  ;;  %594 = vset.pattern.permute.xlu1 %v438_v43  ;;  %593 = vset.pattern.permute.xlu0 %v432_v44  ;;  %v444_v61 = vadd.s32 24, %v425_v42 }
  0x94   : > { %v272_v57 = vpop.xlane.xlu1 %271 }
  0x95   : > { %v287_v59 = vmul.f32 %v279_v39, %v272_v57  ;;  %v260_v60 = vpop.xlane.xlu0 %259 }
  0x96   : > { %v283_v62 = vmul.f32 %v279_v39, %v260_v60 }
  0x97   : > { %v324_v3 = vperm.slane %v287_v59, %v315_v54 }
  0x98   : > { %v316_v7 = vperm.slane %v283_v62, %v315_v54 }
  0x99   : > { %v325_v16 = vsel %vm317_vm3, %v324_v3, %v323_v8 }
  0x9a   : > { %v318_v17 = vsel %vm317_vm3, %v316_v7, %v314_v15 }
  0x9b   : > { %v327_v22 = vsel %vm326_vm4, %v325_v16, %v318_v17 }
  0x9c   : > { %574 = vmatmul.msk.f32.vlgmr.msra.gmra.mxu0 %vm328_vm5, %v327_v22 }
 0x119   : > { %v348_v25 = vpop.f32.mrf.mxu0 }
 0x11a   : > { %v349_v26 = vadd.f32 %v601_v23, %v348_v25 }
 0x11c   : > { %v575_v27 = vmul.f32 -1.442695, %v349_v26 }
 0x11e   : > { %605 = vpow2.f32 %v575_v27 }
 0x124   : > { %v606_v28 = vpop.eup %605 }
 0x125   : > { %v354_v29 = vadd.f32 1.0, %v606_v28 }
 0x127   : > { %607 = vrcp.f32 %v354_v29  ;;  %v366_v33 = vand.u32 2147483648, %v354_v29  ;;  %v364_v35 = vand.u32 2147483647, %v354_v29  ;;  %vm360_vm8 = vweird.f32 %v354_v29 }
 0x129   : > { %v367_v38 = vor.u32 1.1754944e-38, %v366_v33  ;;  %vm365_vm10 = vcmp.eq.f32.partialorder %v364_v35, 8.507059e+37 }
 0x12d   : > { %v608_v30 = vpop.eup %607 }
 0x12e   : > { %v356_v31 = vmul.f32 %v608_v30, %v354_v29  ;;  %vm361_vm7 = vweird.f32 %v608_v30 }
 0x12f   : > { %vm362_vm9 = vmor %vm360_vm8, %vm361_vm7 }
 0x130   : > { %v357_v32 = vsub.f32 1.0, %v356_v31 }
 0x132   : > { %v358_v34 = vmul.f32 %v608_v30, %v357_v32 }
 0x134   : > { %v359_v37 = vadd.f32 %v608_v30, %v358_v34 }
 0x136   : > { %v363_v39 = vsel %vm362_vm9, %v608_v30, %v359_v37 }
 0x137   : > { %v368_v40 = vsel %vm365_vm10, %v367_v38, %v363_v39 }
 0x138   : > { %v370_v41 = vmul.f32 %v368_v40, %v349_v26 }
 0x13a   : > { %577 = vmatmul.msk.f32.vlgmr.msra.gmra.mxu1 %vm376_vm11, %v370_v41 }
 0x1b7   : > { %v401_v46 = vpop.f32.mrf.mxu1 }
 0x1b8   : > { %v402_v47 = vadd.f32 %v602_v45, %v401_v46 }
 0x1ba   : > { %v578_v48 = vmul.f32 -1.442695, %v402_v47 }
 0x1bc   : > { %609 = vpow2.f32 %v578_v48 }
 0x1c2   : > { %v610_v49 = vpop.eup %609 }
 0x1c3   : > { %v407_v50 = vadd.f32 1.0, %v610_v49 }
 0x1c5   : > { %611 = vrcp.f32 %v407_v50  ;;  %v419_v36 = vand.u32 2147483648, %v407_v50  ;;  %v417_v55 = vand.u32 2147483647, %v407_v50  ;;  %vm413_vm13 = vweird.f32 %v407_v50 }
 0x1c7   : > { %v420_v57 = vor.u32 1.1754944e-38, %v419_v36  ;;  %vm418_vm15 = vcmp.eq.f32.partialorder %v417_v55, 8.507059e+37 }
 0x1cb   : > { %v612_v51 = vpop.eup %611 }
 0x1cc   : > { %v409_v52 = vmul.f32 %v612_v51, %v407_v50  ;;  %vm414_vm12 = vweird.f32 %v612_v51 }
 0x1cd   : > { %vm415_vm14 = vmor %vm413_vm13, %vm414_vm12 }
 0x1ce   : > { %v410_v53 = vsub.f32 1.0, %v409_v52 }
 0x1d0   : > { %v411_v54 = vmul.f32 %v612_v51, %v410_v53 }
 0x1d2   : > { %v412_v56 = vadd.f32 %v612_v51, %v411_v54 }
 0x1d4   : > { %v416_v58 = vsel %vm415_vm14, %v612_v51, %v412_v56 }
 0x1d5   : > { %v421_v59 = vsel %vm418_vm15, %v420_v57, %v416_v58 }
 0x1d6   : > { %v423_v60 = vperm.slane %v421_v59, 0  ;;  %v448_v62 = vperm.slane %v421_v59, 1 }
 0x1d8   : > { %440 = vperm.xlu1 %594, %v423_v60   ;;  %434 = vperm.xlu0 %593, %v423_v60  }
 0x1d9   : > { %428 = vperm.xlu2 %592, %v423_v60  }
 0x1e0   : > { %597 = vset.pattern.permute.xlu1 %v432_v44  ;;  %600 = vset.pattern.permute.xlu0 %v444_v61 }
 0x1e1   : > { %595 = vset.pattern.permute.xlu2 %v444_v61 }
 0x1e8   : > { %459 = vperm.xlu1 %597, %v448_v62  }
 0x1e9   : > { %446 = vperm.xlu2 %595, %v423_v60  }
 0x1f0   : > { %599 = vset.pattern.permute.xlu1 %v444_v61 }
 0x1f1   : > { %596 = vset.pattern.permute.xlu2 %v425_v42 }
 0x1f8   : > { %471 = vperm.xlu1 %599, %v448_v62  }
 0x1f9   : > { %453 = vperm.xlu2 %596, %v448_v62  }
 0x201   : > { %598 = vset.pattern.permute.xlu2 %v438_v43 }
 0x209   : > { %465 = vperm.xlu2 %598, %v448_v62  }
 0x233   : > { %v429_v63 = vpop.permute.xlu2 %428 }
 0x234   : > { %v473_v3 = vmul.f32 %v429_v63, %v672_v2  ;;  %v474_v7 = vmul.f32 %v429_v63, %v676_v4 }
 0x236   : > { %489 = vst [vmem:[%s744_s16] sm:$0xff] %v473_v3 }
 0x237   : > { %490 = vst [vmem:[%s744_s16 + $0x8] sm:$0xff] %v474_v7 }
 0x243   : > { %v447_v8 = vpop.permute.xlu2 %446 }
 0x244   : > { %v479_v15 = vmul.f32 %v447_v8, %v708_v20  ;;  %v480_v16 = vmul.f32 %v447_v8, %v710_v21 }
 0x246   : > { %495 = vst [vmem:[%s744_s16 + $0x30] sm:$0xff] %v479_v15 }
 0x247   : > { %496 = vst [vmem:[%s744_s16 + $0x38] sm:$0xff] %v480_v16 }
 0x24a   : > { %v441_v17 = vpop.permute.xlu1 %440  ;;  %v435_v22 = vpop.permute.xlu0 %434 }
 0x24b   : > { %v477_v2 = vmul.f32 %v441_v17, %v678_v5  ;;  %v478_v4 = vmul.f32 %v441_v17, %v680_v6  ;;  %v475_v23 = vmul.f32 %v435_v22, %v690_v11  ;;  %v476_v24 = vmul.f32 %v435_v22, %v692_v12 }
 0x24d   : > { %493 = vst [vmem:[%s744_s16 + $0x20] sm:$0xff] %v477_v2 }
 0x24e   : > { %494 = vst [vmem:[%s744_s16 + $0x28] sm:$0xff] %v478_v4 }
 0x24f   : > { %491 = vst [vmem:[%s744_s16 + $0x10] sm:$0xff] %v475_v23 }
 0x250   : > { %492 = vst [vmem:[%s744_s16 + $0x18] sm:$0xff] %v476_v24 }
 0x253   : > { %v454_v20 = vpop.permute.xlu2 %453 }
 0x254   : > { %v481_v21 = vmul.f32 %v454_v20, %v668_v0  ;;  %v482_v25 = vmul.f32 %v454_v20, %v670_v1 }
 0x256   : > { %497 = vst [vmem:[%s744_s16 + $0x40] sm:$0xff] %v481_v21 }
 0x257   : > { %498 = vst [vmem:[%s744_s16 + $0x48] sm:$0xff] %v482_v25 }
 0x25a   : > { %v460_v5 = vpop.permute.xlu1 %459 }
 0x25b   : > { %v483_v6 = vmul.f32 %v460_v5, %v686_v9  ;;  %v484_v11 = vmul.f32 %v460_v5, %v688_v10 }
 0x25d   : > { %499 = vst [vmem:[%s744_s16 + $0x50] sm:$0xff] %v483_v6 }
 0x25e   : > { %500 = vst [vmem:[%s744_s16 + $0x58] sm:$0xff] %v484_v11 }
 0x263   : > { %v466_v12 = vpop.permute.xlu2 %465 }
 0x264   : > { %v485_v26 = vmul.f32 %v466_v12, %v694_v13  ;;  %v486_v27 = vmul.f32 %v466_v12, %v696_v14 }
 0x266   : > { %501 = vst [vmem:[%s744_s16 + $0x60] sm:$0xff] %v485_v26 }
 0x267   : > { %502 = vst [vmem:[%s744_s16 + $0x68] sm:$0xff] %v486_v27 }
 0x26a   : > { %v472_v0 = vpop.permute.xlu1 %471 }
 0x26b   : > { %v487_v1 = vmul.f32 %v472_v0, %v704_v18  ;;  %v488_v28 = vmul.f32 %v472_v0, %v706_v19 }
 0x26d   : > { %503 = vst [vmem:[%s744_s16 + $0x70] sm:$0xff] %v487_v1 }
 0x26e   : > { %504 = vst [vmem:[%s744_s16 + $0x78] sm:$0xff] %v488_v28 }
 0x26f PF: > { %s15_s18 = sadd.s32 1, %s619_s18  }
 0x270   : > { %p12_p4 = scmp.ge.s32.totalorder %s15_s18, 6  }
 0x272   :  { %14 = sbr.rel (!%p12_p4) target bundleno = 1 (0x1), region = 70 }

</bundles_post_ra>
